<compile_context>
chip_gen: v7x
topology: tpu7x:2x2x1
jax: 0.10.0
libtpu: 0.0.40
codegen_flags: <defaults>
</compile_context>

<pallas_src>
import functools

import jax
import jax.numpy as jnp
import numpy as np
from jax import lax
from jax.experimental import pallas as pl
from jax.experimental.pallas import tpu as pltpu


# ----------------------------------------------------------------------------
# Helpers
# ----------------------------------------------------------------------------
def _round_up(x, m):
    return ((x + m - 1) // m) * m


def _itemsize(dt):
    return np.dtype(dt).itemsize


def _vmem_budget_and_limit():
    """Tile-selection budget + scoped-VMEM limit. Conservative (64 MiB, v7x)
    fallback if the hardware query fails."""
    try:
        cap = int(pltpu.get_tpu_info().vmem_capacity_bytes)
    except Exception:
        cap = 64 * 1024 * 1024
    budget = min(cap // 4, 32 * 1024 * 1024)
    limit = min(cap // 2, 64 * 1024 * 1024)
    return budget, limit


def _space_to_depth_2x2(x_nhwc):
    """(N, H, W, C) -> (N, H//2, W//2, 4*C); channel index = (sr*2 + sc)*C + c."""
    N, H, W, C = x_nhwc.shape
    Ho, Wo = H // 2, W // 2
    y = x_nhwc.reshape(N, Ho, 2, Wo, 2, C)
    y = jnp.transpose(y, (0, 1, 3, 2, 4, 5))
    return y.reshape(N, Ho, Wo, 4 * C)


def pack_conv3x3_s2_weights(w_hwio, cout_padded, dtype):
    """Split a 3x3 / stride-2 HWIO kernel into the 5 non-zero per-tap matrices
    of the space-to-depth formulation (total K = 9*Cin), Cout zero-padded to a
    multiple of 128 for lane-dense MXU/output tiles.

    Tap/sub-pixel correspondence (tap = 2x2 stride-1 window over the
    top/left-padded S2D tensor, sub-pixel channel blocks ordered (sr, sc)):
      tap(0,0): block (1,1)            <- w[0,0]
      tap(0,1): blocks (1,0),(1,1)     <- w[0,1], w[0,2]
      tap(1,0): blocks (0,1) and (1,1) <- w[1,0], w[2,0]
      tap(1,1): all four blocks        <- w[1,1], w[1,2], w[2,1], w[2,2]
    """
    Cout = w_hwio.shape[3]
    pad = ((0, 0), (0, cout_padded - Cout))
    w00 = w_hwio[0, 0]
    w01 = jnp.concatenate([w_hwio[0, 1], w_hwio[0, 2]], axis=0)
    w10a = w_hwio[1, 0]
    w10b = w_hwio[2, 0]
    w11 = jnp.concatenate([w_hwio[1, 1], w_hwio[1, 2],
                           w_hwio[2, 1], w_hwio[2, 2]], axis=0)
    return tuple(jnp.pad(w, pad).astype(dtype) for w in (w00, w01, w10a, w10b, w11))


# ----------------------------------------------------------------------------
# Conv 3x3 / stride 2 / pad 1  (2x2 stride-1 conv over space-to-depth input)
# ----------------------------------------------------------------------------
def _conv_kernel(y_ref, h_ref, w00_ref, w01_ref, w10a_ref, w10b_ref, w11_ref,
                 b_ref, o_ref, ys_ref, *, TH, Wop, C):
    # y_ref  : (1, TH, Wop+1, 4C)  padded-S2D rows [t*TH, (t+1)*TH)
    # h_ref  : (1, 1,  Wop+1, 4C)  padded-S2D row  (t+1)*TH   (bottom halo)
    # w*_ref : per-tap weights (K_tap, TCO), bf16
    # b_ref  : (1, TCO) f32
    # o_ref  : (1, TH*Wop, TCO)    lane-dense output tile
    # ys_ref : (TH, Wop+1, 4C)     scratch: rows shifted down by one
    if TH > 1:
        ys_ref[0:TH - 1] = y_ref[0, 1:TH]
    ys_ref[TH - 1:TH] = h_ref[0]

    y = y_ref[0]
    ys = ys_ref[...]
    M = TH * Wop
    f32 = jnp.float32

    # 5 per-tap matmuls, K = Cin + 2Cin + Cin + Cin + 4Cin = 9*Cin, f32 accum.
    acc = jnp.dot(y[:, 0:Wop, 3 * C:4 * C].reshape(M, C), w00_ref[...],
                  preferred_element_type=f32)
    acc = acc + jnp.dot(y[:, 1:Wop + 1, 2 * C:4 * C].reshape(M, 2 * C), w01_ref[...],
                        preferred_element_type=f32)
    acc = acc + jnp.dot(ys[:, 0:Wop, 1 * C:2 * C].reshape(M, C), w10a_ref[...],
                        preferred_element_type=f32)
    acc = acc + jnp.dot(ys[:, 0:Wop, 3 * C:4 * C].reshape(M, C), w10b_ref[...],
                        preferred_element_type=f32)
    acc = acc + jnp.dot(ys[:, 1:Wop + 1, :].reshape(M, 4 * C), w11_ref[...],
                        preferred_element_type=f32)
    acc = acc + b_ref[...]
    o_ref[0] = acc.astype(o_ref.dtype)


def _select_conv_tiles(N, Ho, Wop, C4, Cp, in_b, out_b, budget):
    K = 9 * (C4 // 4)

    def est(th, tco):
        e = (2 * th * (Wop + 1) * C4 * in_b      # input block (double buffered)
             + 2 * (Wop + 1) * C4 * in_b         # halo row
             + 2 * K * tco * in_b                # per-tap weight tiles
             + 2 * tco * 4                       # bias
             + 2 * th * Wop * tco * out_b        # output tile
             + th * (Wop + 1) * C4 * in_b        # row-shift scratch
             + th * Wop * tco * 4                # f32 accumulator
             + th * Wop * K * in_b)              # sliced-lhs materialization
        return int(e * 1.15)                     # headroom for Mosaic internals

    # Prefer fully-resident weights (TCO = padded Cout), else 256/128 tiles.
    tco_opts = [Cp]
    for t in (256, 128):
        if t < Cp and Cp % t == 0:
            tco_opts.append(t)
    divs = [d for d in range(Ho, 0, -1) if Ho % d == 0]
    # Prefer >= 2 parallel grid tiles so v7x's second TensorCore gets work.
    th_opts = ([d for d in divs if N * (Ho // d) >= 2]
               + [d for d in divs if N * (Ho // d) < 2])
    for tco in tco_opts:
        for th in th_opts:
            if est(th, tco) <= budget:
                return th, tco
    return 1, tco_opts[-1]


def conv_downsample_nhwc(x_nhwc, w_taps, bias_padded, *, out_channels,
                         compute_dtype=jnp.bfloat16):
    """3x3 / stride-2 / pad-1 convolution (NHWC in, NHWC out)."""
    N, H, W, Cin = x_nhwc.shape
    w00, w01, w10a, w10b, w11 = w_taps
    Cp = bias_padded.shape[-1]

    # Odd spatial sizes: one zero row/col on bottom/right == PyTorch zero pad.
    if (H % 2) or (W % 2):
        x_nhwc = jnp.pad(x_nhwc, ((0, 0), (0, H % 2), (0, W % 2), (0, 0)))
    Ho, Wo = (H + 1) // 2, (W + 1) // 2
    Wop = _round_up(Wo, 8)                       # layout-friendly output width
    C4 = 4 * Cin

    # One fused XLA layout pass: bf16 cast + space-to-depth + top/left pad
    # (+ right pad up to Wop).
    y = _space_to_depth_2x2(x_nhwc.astype(compute_dtype))
    y_pad = jnp.pad(y, ((0, 0), (1, 0), (1, Wop - Wo), (0, 0)))  # (N, Ho+1, Wop+1, C4)

    budget, vmem_limit = _vmem_budget_and_limit()
    TH, TCO = _select_conv_tiles(N, Ho, Wop, C4, Cp,
                                 _itemsize(compute_dtype), _itemsize(x_nhwc.dtype),
                                 budget)
    n_th, n_co = Ho // TH, Cp // TCO

    y_main = y_pad[:, :Ho]                       # rows [t*TH, (t+1)*TH) per tile
    y_halo = y_pad[:, TH::TH]                    # row (t+1)*TH  -> (N, n_th, Wop+1, C4)

    kernel = functools.partial(_conv_kernel, TH=TH, Wop=Wop, C=Cin)
    out_flat = pl.pallas_call(
        kernel,
        out_shape=jax.ShapeDtypeStruct((N, Ho * Wop, Cp), x_nhwc.dtype),
        grid_spec=pltpu.PrefetchScalarGridSpec(
            num_scalar_prefetch=0,
            grid=(N, n_th, n_co),
            in_specs=[
                pl.BlockSpec((1, TH, Wop + 1, C4), lambda n, t, c: (n, t, 0, 0)),
                pl.BlockSpec((1, 1, Wop + 1, C4), lambda n, t, c: (n, t, 0, 0)),
                pl.BlockSpec((Cin, TCO), lambda n, t, c: (0, c)),
                pl.BlockSpec((2 * Cin, TCO), lambda n, t, c: (0, c)),
                pl.BlockSpec((Cin, TCO), lambda n, t, c: (0, c)),
                pl.BlockSpec((Cin, TCO), lambda n, t, c: (0, c)),
                pl.BlockSpec((4 * Cin, TCO), lambda n, t, c: (0, c)),
                pl.BlockSpec((1, TCO), lambda n, t, c: (0, c)),
            ],
            out_specs=pl.BlockSpec((1, TH * Wop, TCO), lambda n, t, c: (n, t, c)),
            scratch_shapes=[pltpu.VMEM((TH, Wop + 1, C4), compute_dtype)],
        ),
        compiler_params=pltpu.CompilerParams(
            dimension_semantics=("parallel", "parallel", "arbitrary"),
            vmem_limit_bytes=vmem_limit,
        ),
    )(y_main, y_halo, w00, w01, w10a, w10b, w11, bias_padded)

    out = out_flat.reshape(N, Ho, Wop, Cp)[:, :, :Wo, :out_channels]
    return out


# ----------------------------------------------------------------------------
# AvgPool 2x2 / stride 2 (use_conv=False path) — no wrapper-side HBM pass.
# ----------------------------------------------------------------------------
def _avgpool_kernel(x_ref, o_ref, *, C):
    # x_ref: (1, TR, 2, Wo, 2C); dim 2 = row parity, lane halves = col parity.
    x = x_ref[0]
    a = x[:, 0].astype(jnp.float32) + x[:, 1].astype(jnp.float32)   # (TR, Wo, 2C)
    out = (a[:, :, 0:C] + a[:, :, C:2 * C]) * 0.25                  # (TR, Wo, C)
    o_ref[0] = out.astype(o_ref.dtype)


def _select_pool_tile(Ho, Wo, C, nbytes, budget):
    for tr in [d for d in range(Ho, 0, -1) if Ho % d == 0]:
        est = int((2 * tr * 2 * Wo * 2 * C * nbytes      # input block (double buffered)
                   + 2 * tr * Wo * C * nbytes            # output
                   + 3 * tr * Wo * 2 * C * 4) * 1.15)    # f32 temporaries
        if est <= budget:
            return tr
    return 1


def avgpool_downsample_nhwc(x_nhwc):
    """2x2 / stride-2 average pool (NHWC in, NHWC out)."""
    N, H, W, C = x_nhwc.shape
    Ho, Wo = H // 2, W // 2
    x = x_nhwc[:, :2 * Ho, :2 * Wo]                       # floor semantics, no-op if even
    # Pure-metadata reshape (row-major): no extra HBM pass.
    x5 = x.reshape(N, Ho, 2, Wo, 2 * C)

    budget, vmem_limit = _vmem_budget_and_limit()
    TR = _select_pool_tile(Ho, Wo, C, _itemsize(x.dtype), budget)

    out = pl.pallas_call(
        functools.partial(_avgpool_kernel, C=C),
        out_shape=jax.ShapeDtypeStruct((N, Ho, Wo, C), x.dtype),
        grid_spec=pltpu.PrefetchScalarGridSpec(
            num_scalar_prefetch=0,
            grid=(N, Ho // TR),
            in_specs=[pl.BlockSpec((1, TR, 2, Wo, 2 * C),
                                   lambda n, t: (n, t, 0, 0, 0))],
            out_specs=pl.BlockSpec((1, TR, Wo, C), lambda n, t: (n, t, 0, 0)),
        ),
        compiler_params=pltpu.CompilerParams(
            dimension_semantics=("parallel", "parallel"),
            vmem_limit_bytes=vmem_limit,
        ),
    )(x5)
    return out


# ----------------------------------------------------------------------------
# Module wrapper (NCHW in / NCHW out, like PyTorch)
# ----------------------------------------------------------------------------
class DownsamplePallas:
    def __init__(self, channels, use_conv, dims=2, out_channels=None, padding=1,
                 key=None, compute_dtype=jnp.bfloat16):
        assert dims == 2, "only dims=2 implemented"  # TODO(synk): dims=1 / dims=3 variants
        self.channels = channels
        self.out_channels = out_channels or channels
        self.use_conv = use_conv
        self.compute_dtype = compute_dtype
        if use_conv:
            assert padding == 1
            key = key if key is not None else jax.random.PRNGKey(0)
            kw, kb = jax.random.split(key)
            fan_in = channels * 3 * 3
            bound = 1.0 / np.sqrt(fan_in)
            self.w_hwio = jax.random.uniform(
                kw, (3, 3, channels, self.out_channels), jnp.float32, -bound, bound)
            self.bias = jax.random.uniform(
                kb, (self.out_channels,), jnp.float32, -bound, bound)
            # MXU-ready per-tap weights (K = 9*Cin total), Cout padded to 128.
            self.cout_padded = _round_up(self.out_channels, 128)
            self.w_taps = pack_conv3x3_s2_weights(self.w_hwio, self.cout_padded,
                                                  compute_dtype)
            self.bias_padded = jnp.pad(
                self.bias, (0, self.cout_padded - self.out_channels)
            ).reshape(1, self.cout_padded).astype(jnp.float32)
        else:
            assert channels == self.out_channels
        # TODO(synk): small-channel (C4 < 128) layers could fold W into the lane
        # dimension for better vreg/MXU utilization; not implemented here.

    def forward_nhwc(self, x_nhwc):
        if self.use_conv:
            return conv_downsample_nhwc(x_nhwc, self.w_taps, self.bias_padded,
                                        out_channels=self.out_channels,
                                        compute_dtype=self.compute_dtype)
        return avgpool_downsample_nhwc(x_nhwc)

    def __call__(self, x_nchw):
        assert x_nchw.shape[1] == self.channels
        x_nhwc = jnp.transpose(x_nchw, (0, 2, 3, 1))
        y_nhwc = self.forward_nhwc(x_nhwc)
        return jnp.transpose(y_nhwc, (0, 3, 1, 2))


# ----------------------------------------------------------------------------
# Main
# ----------------------------------------------------------------------------
if __name__ == "__main__":
    key = jax.random.PRNGKey(0)
    kx, kp = jax.random.split(key)

    N, C, H, W = 2, 4, 16, 16
    Cout = 8
    x = jax.random.normal(kx, (N, C, H, W), jnp.float32)

    # use_conv=True path (bf16 MXU compute, f32 accumulation)
    mod = DownsamplePallas(C, use_conv=True, dims=2, out_channels=Cout, key=kp)
    y = jax.block_until_ready(mod(x))
    assert y.shape == (N, Cout, H // 2, W // 2), y.shape

    # reference: XLA conv with the same bf16 operand rounding, f32 accumulation
    w_oihw = jnp.transpose(mod.w_hwio, (3, 2, 0, 1))
    y_ref = lax.conv_general_dilated(
        x.astype(jnp.bfloat16), w_oihw.astype(jnp.bfloat16),
        window_strides=(2, 2), padding=((1, 1), (1, 1)),
        dimension_numbers=("NCHW", "OIHW", "NCHW"),
        preferred_element_type=jnp.float32,
    ) + mod.bias.reshape(1, Cout, 1, 1)
    np.testing.assert_allclose(np.asarray(y), np.asarray(y_ref), rtol=2e-2, atol=2e-2)

    # use_conv=False (avg pool) path
    mod_pool = DownsamplePallas(C, use_conv=False, dims=2)
    y2 = jax.block_until_ready(mod_pool(x))
    y2_ref = jnp.mean(x.reshape(N, C, H // 2, 2, W // 2, 2), axis=(3, 5))
    np.testing.assert_allclose(np.asarray(y2), np.asarray(y2_ref), rtol=1e-5, atol=1e-5)

    print("KERNEL_OK")
</pallas_src>

<mosaic_0001>
module attributes {stable_mosaic.version = 11 : i64} {
  func.func @_conv_kernel(%arg0: i32, %arg1: i32, %arg2: i32, %arg3: memref<1x8x9x16xbf16, #tpu.memory_space<vmem>>, %arg4: memref<1x1x9x16xbf16, #tpu.memory_space<vmem>>, %arg5: memref<4x128xbf16, #tpu.memory_space<vmem>>, %arg6: memref<8x128xbf16, #tpu.memory_space<vmem>>, %arg7: memref<4x128xbf16, #tpu.memory_space<vmem>>, %arg8: memref<4x128xbf16, #tpu.memory_space<vmem>>, %arg9: memref<16x128xbf16, #tpu.memory_space<vmem>>, %arg10: memref<1x128xf32, #tpu.memory_space<vmem>>, %arg11: memref<1x64x128xf32, #tpu.memory_space<vmem>>, %arg12: memref<8x9x16xbf16, #tpu.memory_space<vmem>>) attributes {dimension_semantics = [#tpu.dimension_semantics<parallel>, #tpu.dimension_semantics<parallel>, #tpu.dimension_semantics<arbitrary>], iteration_bounds = array<i64: 2, 1, 1>, scalar_prefetch = 0 : i64, scratch_operands = 1 : i64, tpu.core_type = #tpu.core_type<tc>, window_params = [{transform_indices = @transform_0, window_bounds = array<i64: 1, 8, 9, 16>}, {transform_indices = @transform_1, window_bounds = array<i64: 1, 1, 9, 16>}, {transform_indices = @transform_2, window_bounds = array<i64: 4, 128>}, {transform_indices = @transform_3, window_bounds = array<i64: 8, 128>}, {transform_indices = @transform_4, window_bounds = array<i64: 4, 128>}, {transform_indices = @transform_5, window_bounds = array<i64: 4, 128>}, {transform_indices = @transform_6, window_bounds = array<i64: 16, 128>}, {transform_indices = @transform_7, window_bounds = array<i64: 1, 128>}, {transform_indices = @transform_8, window_bounds = array<i64: 1, 64, 128>}]} {
    %c0 = arith.constant 0 : index
    %c1 = arith.constant 1 : index
    %c0_0 = arith.constant 0 : index
    %c0_1 = arith.constant 0 : index
    %0 = vector.load %arg3[%c0, %c1, %c0_0, %c0_1] : memref<1x8x9x16xbf16, #tpu.memory_space<vmem>>, vector<1x7x9x16xbf16>
    %1 = vector.shape_cast %0 : vector<1x7x9x16xbf16> to vector<7x9x16xbf16>
    %c0_2 = arith.constant 0 : index
    %c0_3 = arith.constant 0 : index
    %c0_4 = arith.constant 0 : index
    %2 = vector.load %arg12[%c0_2, %c0_3, %c0_4] : memref<8x9x16xbf16, #tpu.memory_space<vmem>>, vector<7x9x16xbf16>
    tpu.vector_store %arg12[%c0_2, %c0_3, %c0_4], %1 {strides = array<i32>} : memref<8x9x16xbf16, #tpu.memory_space<vmem>>, vector<7x9x16xbf16>,
    %c0_5 = arith.constant 0 : index
    %c0_6 = arith.constant 0 : index
    %c0_7 = arith.constant 0 : index
    %c0_8 = arith.constant 0 : index
    %3 = vector.load %arg4[%c0_5, %c0_6, %c0_7, %c0_8] : memref<1x1x9x16xbf16, #tpu.memory_space<vmem>>, vector<1x1x9x16xbf16>
    %4 = vector.shape_cast %3 : vector<1x1x9x16xbf16> to vector<1x9x16xbf16>
    %c7 = arith.constant 7 : index
    %c0_9 = arith.constant 0 : index
    %c0_10 = arith.constant 0 : index
    %5 = vector.load %arg12[%c7, %c0_9, %c0_10] : memref<8x9x16xbf16, #tpu.memory_space<vmem>>, vector<1x9x16xbf16>
    tpu.vector_store %arg12[%c7, %c0_9, %c0_10], %4 {strides = array<i32>} : memref<8x9x16xbf16, #tpu.memory_space<vmem>>, vector<1x9x16xbf16>,
    %c0_11 = arith.constant 0 : index
    %c0_12 = arith.constant 0 : index
    %c0_13 = arith.constant 0 : index
    %c0_14 = arith.constant 0 : index
    %6 = vector.load %arg3[%c0_11, %c0_12, %c0_13, %c0_14] : memref<1x8x9x16xbf16, #tpu.memory_space<vmem>>, vector<1x8x9x16xbf16>
    %7 = vector.shape_cast %6 : vector<1x8x9x16xbf16> to vector<8x9x16xbf16>
    %c0_15 = arith.constant 0 : index
    %c0_16 = arith.constant 0 : index
    %c0_17 = arith.constant 0 : index
    %8 = vector.load %arg12[%c0_15, %c0_16, %c0_17] : memref<8x9x16xbf16, #tpu.memory_space<vmem>>, vector<8x9x16xbf16>
    %9 = vector.extract_strided_slice %7 {offsets = [0, 0, 12], sizes = [8, 8, 4], strides = [1, 1, 1]} : vector<8x9x16xbf16> to vector<8x8x4xbf16>
    %10 = vector.shape_cast %9 : vector<8x8x4xbf16> to vector<64x4xbf16>
    %c0_18 = arith.constant 0 : index
    %c0_19 = arith.constant 0 : index
    %11 = vector.load %arg5[%c0_18, %c0_19] : memref<4x128xbf16, #tpu.memory_space<vmem>>, vector<4x128xbf16>
    %cst = arith.constant dense<0.000000e+00> : vector<64x128xf32>
    %12 = tpu.matmul %10, %11, %cst {dimension_numbers = #tpu.dot_dimension_numbers<[1], [0], [0], [1], [0, 0, 1, 1], [], []>} : vector<64x4xbf16>, vector<4x128xbf16>, vector<64x128xf32> -> vector<64x128xf32>
    %13 = vector.extract_strided_slice %7 {offsets = [0, 1, 8], sizes = [8, 8, 8], strides = [1, 1, 1]} : vector<8x9x16xbf16> to vector<8x8x8xbf16>
    %14 = vector.shape_cast %13 : vector<8x8x8xbf16> to vector<64x8xbf16>
    %c0_20 = arith.constant 0 : index
    %c0_21 = arith.constant 0 : index
    %15 = vector.load %arg6[%c0_20, %c0_21] : memref<8x128xbf16, #tpu.memory_space<vmem>>, vector<8x128xbf16>
    %cst_22 = arith.constant dense<0.000000e+00> : vector<64x128xf32>
    %16 = tpu.matmul %14, %15, %cst_22 {dimension_numbers = #tpu.dot_dimension_numbers<[1], [0], [0], [1], [0, 0, 1, 1], [], []>} : vector<64x8xbf16>, vector<8x128xbf16>, vector<64x128xf32> -> vector<64x128xf32>
    %17 = arith.addf %12, %16 : vector<64x128xf32>
    %18 = vector.extract_strided_slice %8 {offsets = [0, 0, 4], sizes = [8, 8, 4], strides = [1, 1, 1]} : vector<8x9x16xbf16> to vector<8x8x4xbf16>
    %19 = vector.shape_cast %18 : vector<8x8x4xbf16> to vector<64x4xbf16>
    %c0_23 = arith.constant 0 : index
    %c0_24 = arith.constant 0 : index
    %20 = vector.load %arg7[%c0_23, %c0_24] : memref<4x128xbf16, #tpu.memory_space<vmem>>, vector<4x128xbf16>
    %cst_25 = arith.constant dense<0.000000e+00> : vector<64x128xf32>
    %21 = tpu.matmul %19, %20, %cst_25 {dimension_numbers = #tpu.dot_dimension_numbers<[1], [0], [0], [1], [0, 0, 1, 1], [], []>} : vector<64x4xbf16>, vector<4x128xbf16>, vector<64x128xf32> -> vector<64x128xf32>
    %22 = arith.addf %17, %21 : vector<64x128xf32>
    %23 = vector.extract_strided_slice %8 {offsets = [0, 0, 12], sizes = [8, 8, 4], strides = [1, 1, 1]} : vector<8x9x16xbf16> to vector<8x8x4xbf16>
    %24 = vector.shape_cast %23 : vector<8x8x4xbf16> to vector<64x4xbf16>
    %c0_26 = arith.constant 0 : index
    %c0_27 = arith.constant 0 : index
    %25 = vector.load %arg8[%c0_26, %c0_27] : memref<4x128xbf16, #tpu.memory_space<vmem>>, vector<4x128xbf16>
    %cst_28 = arith.constant dense<0.000000e+00> : vector<64x128xf32>
    %26 = tpu.matmul %24, %25, %cst_28 {dimension_numbers = #tpu.dot_dimension_numbers<[1], [0], [0], [1], [0, 0, 1, 1], [], []>} : vector<64x4xbf16>, vector<4x128xbf16>, vector<64x128xf32> -> vector<64x128xf32>
    %27 = arith.addf %22, %26 : vector<64x128xf32>
    %28 = vector.extract_strided_slice %8 {offsets = [0, 1, 0], sizes = [8, 8, 16], strides = [1, 1, 1]} : vector<8x9x16xbf16> to vector<8x8x16xbf16>
    %29 = vector.shape_cast %28 : vector<8x8x16xbf16> to vector<64x16xbf16>
    %c0_29 = arith.constant 0 : index
    %c0_30 = arith.constant 0 : index
    %30 = vector.load %arg9[%c0_29, %c0_30] : memref<16x128xbf16, #tpu.memory_space<vmem>>, vector<16x128xbf16>
    %cst_31 = arith.constant dense<0.000000e+00> : vector<64x128xf32>
    %31 = tpu.matmul %29, %30, %cst_31 {dimension_numbers = #tpu.dot_dimension_numbers<[1], [0], [0], [1], [0, 0, 1, 1], [], []>} : vector<64x16xbf16>, vector<16x128xbf16>, vector<64x128xf32> -> vector<64x128xf32>
    %32 = arith.addf %27, %31 : vector<64x128xf32>
    %c0_32 = arith.constant 0 : index
    %c0_33 = arith.constant 0 : index
    %33 = vector.load %arg10[%c0_32, %c0_33] : memref<1x128xf32, #tpu.memory_space<vmem>>, vector<1x128xf32>
    %34 = vector.broadcast %33 : vector<1x128xf32> to vector<64x128xf32>
    %35 = arith.addf %32, %34 : vector<64x128xf32>
    %c0_34 = arith.constant 0 : index
    %c0_35 = arith.constant 0 : index
    %c0_36 = arith.constant 0 : index
    %36 = vector.load %arg11[%c0_34, %c0_35, %c0_36] : memref<1x64x128xf32, #tpu.memory_space<vmem>>, vector<1x64x128xf32>
    %37 = vector.shape_cast %36 : vector<1x64x128xf32> to vector<64x128xf32>
    %38 = vector.shape_cast %35 : vector<64x128xf32> to vector<1x64x128xf32>
    tpu.vector_store %arg11[%c0_34, %c0_35, %c0_36], %38 {strides = array<i32>} : memref<1x64x128xf32, #tpu.memory_space<vmem>>, vector<1x64x128xf32>,
    return
  }
  func.func @transform_0(%arg0: i32, %arg1: i32, %arg2: i32) -> (i32, i32, i32, i32) {
    %c0_i32 = arith.constant 0 : i32
    %c0_i32_0 = arith.constant 0 : i32
    %c0_i32_1 = arith.constant 0 : i32
    return %arg0, %arg1, %c0_i32, %c0_i32_0 : i32, i32, i32, i32
  }
  func.func @transform_1(%arg0: i32, %arg1: i32, %arg2: i32) -> (i32, i32, i32, i32) {
    %c0_i32 = arith.constant 0 : i32
    %c0_i32_0 = arith.constant 0 : i32
    %c0_i32_1 = arith.constant 0 : i32
    return %arg0, %arg1, %c0_i32, %c0_i32_0 : i32, i32, i32, i32
  }
  func.func @transform_2(%arg0: i32, %arg1: i32, %arg2: i32) -> (i32, i32) {
    %c0_i32 = arith.constant 0 : i32
    %c0_i32_0 = arith.constant 0 : i32
    return %c0_i32, %arg2 : i32, i32
  }
  func.func @transform_3(%arg0: i32, %arg1: i32, %arg2: i32) -> (i32, i32) {
    %c0_i32 = arith.constant 0 : i32
    %c0_i32_0 = arith.constant 0 : i32
    return %c0_i32, %arg2 : i32, i32
  }
  func.func @transform_4(%arg0: i32, %arg1: i32, %arg2: i32) -> (i32, i32) {
    %c0_i32 = arith.constant 0 : i32
    %c0_i32_0 = arith.constant 0 : i32
    return %c0_i32, %arg2 : i32, i32
  }
  func.func @transform_5(%arg0: i32, %arg1: i32, %arg2: i32) -> (i32, i32) {
    %c0_i32 = arith.constant 0 : i32
    %c0_i32_0 = arith.constant 0 : i32
    return %c0_i32, %arg2 : i32, i32
  }
  func.func @transform_6(%arg0: i32, %arg1: i32, %arg2: i32) -> (i32, i32) {
    %c0_i32 = arith.constant 0 : i32
    %c0_i32_0 = arith.constant 0 : i32
    return %c0_i32, %arg2 : i32, i32
  }
  func.func @transform_7(%arg0: i32, %arg1: i32, %arg2: i32) -> (i32, i32) {
    %c0_i32 = arith.constant 0 : i32
    %c0_i32_0 = arith.constant 0 : i32
    return %c0_i32, %arg2 : i32, i32
  }
  func.func @transform_8(%arg0: i32, %arg1: i32, %arg2: i32) -> (i32, i32, i32) {
    %c0_i32 = arith.constant 0 : i32
    return %arg0, %arg1, %arg2 : i32, i32, i32
  }
}

</mosaic_0001>

<bundles_post_ra>
// kernel: tpu_custom_call.1
= control target key start
LH: loop header
LB: loop body
LE: loop exit
PB: predicated region body
PF: predicated region fallthrough
CT: control target
= control target key end

     0   :  { %13 = vsyncpa [#allocation4], 0  ;;  %s2325_s0 = inlined_call_operand.vmem [shape: bf16[2,8,9,16], index: 0, kind: input, shape index: {}]   ;;  %s2326_s1 = inlined_call_operand.vmem [shape: bf16[2,1,9,16], index: 1, kind: input, shape index: {}]   ;;  %s2327_s2 = inlined_call_operand.vmem [shape: bf16[4,128], index: 2, kind: input, shape index: {}]   ;;  %s2328_s3 = inlined_call_operand.vmem [shape: bf16[8,128], index: 3, kind: input, shape index: {}]   ;;  %s2329_s4 = inlined_call_operand.vmem [shape: bf16[4,128], index: 4, kind: input, shape index: {}]   ;;  %s2330_s5 = inlined_call_operand.vmem [shape: bf16[4,128], index: 5, kind: input, shape index: {}]   ;;  %s2331_s6 = inlined_call_operand.vmem [shape: bf16[16,128], index: 6, kind: input, shape index: {}]   ;;  %s2332_s7 = inlined_call_operand.vmem [shape: f32[1,128], index: 7, kind: input, shape index: {}]   ;;  %s2333_s8 = inlined_call_operand.hbm [shape: f32[2,64,128], index: 8, kind: output, shape index: {}]  }
   0x1   :  { %15 = vsyncpa [#allocation4 + $0x1], 0  ;;  %s1948_s27 = smov 0   ;;  %s1950_s28 = smov 0  }
   0x2   :  { %s1952_s29 = smov 0   ;;  %s1954_s30 = smov 0  }
   0x3   :  { %s1956_s9 = smov 0   ;;  %s1958_s10 = smov 0  }
   0x4 LB: > { %s1562_s11 = sadd.s32 4294967295, %s1895_s10   ;;  %s1563_s12 = sadd.s32 4294967294, %s1895_s10   ;;  %s1895_s10 = sphi %s1958_s10, %s21_s10   ;;  %s1891_s9 = sphi %s1956_s9, %s2344_s9   ;;  %s1887_s30 = sphi %s1954_s30, %s2343_s30   ;;  %s1883_s29 = sphi %s1952_s29, %s2342_s29   ;;  %s1879_s28 = sphi %s1950_s28, %s2341_s28   ;;  %s1875_s27 = sphi %s1948_s27, %s2340_s27  }
   0x5   : > { %s40_s13 = sadd.s32 1, %s1891_s9  ;;  %s263_s14 = sadd.s32 1, %s1883_s29 }
   0x6   : > { %p42_p0 = scmp.ge.s32.totalorder %s40_s13, 2  ;;  %p273_p1 = scmp.ne.s32.totalorder %s1883_s29, %s1879_s28 }
   0x7   : > { %p274_p2 = scmp.eq.s32.totalorder %s1562_s11, 1  ;;  %p279_p3 = scmp.ne.s32.totalorder %s1879_s28, %s1875_s27 }
   0x8   : > { %s2346_s13 = smov (%p42_p0, %s40_s13), 0  ;;  %p280_p5 = scmp.eq.s32.totalorder %s1563_s12, 1 }
   0x9   : > { %p1988_p4 = por %p274_p2, %p273_p1  ;;  %s256_s16 = ssub.s32 %s1891_s9, %s2346_s13 }
   0xa   : > { %p1572_p6 = scmp.ge.s32.totalorder %s1895_s10, 1  ;;  %p261_p7 = scmp.eq.s32.totalorder %s256_s16, 0 }
   0xb   : > { %p1995_p8 = por %p280_p5, %p279_p3  ;;  %p365_p9 = scmp.lt.s32.totalorder %s1895_s10, 3 }
   0xc   : > { %s2001_s18 = scalar_select %p261_p7, %s1883_s29, %s263_s14  }
   0xd   : > { %p366_p10 = pnand %p1572_p6, %p365_p9 }
   0xe   : > { %p437_p11 = scmp.lt.s32.totalorder (!%p366_p10), %s1887_s30, 1  ;;  %vm568_vm0 = vsmask.f32 (!%p366_p10), 3328  ;;  %vm717_vm1 = vcmask (!%p366_p10), 1043456   ;;  %vm569_vm2 = vsmask.f32 (!%p366_p10), 7440 }
   0xf   : > { %369 = sbr.rel (%p366_p10) target bundleno = 439 (0x1b7), region = 52  ;;  %v683_v0 = vld [vmem:[%s2328_s3] sm:$0xf] (!%p366_p10)  ;;  %vm496_vm3 = vcmask (!%p366_p10), 125952   ;;  %vm498_vm4 = vcmask (!%p366_p10), 122880   ;;  %vm827_vm6 = vcmask (!%p366_p10), 1041408   ;;  %vm2047_vm7 = vmor (!%p366_p10), %vm568_vm0, %vm569_vm2 }
  0x10   : > { %1747 = vmatprep.subr.msk.bf16.mxu1 (!%p366_p10), %vm717_vm1, %v683_v0  ;;  %v719_v1 = vsel (!%p366_p10), %vm717_vm1, %v683_v0, 0  ;;  %vm499_vm5 = vsmask.f32 (!%p366_p10), 256  ;;  %v2019_v2 = vld [vmem:[%s2329_s4] sm:$0x3] (!%p366_p10)  ;;  %s1897_s12 = smov (!%p366_p10), 120  }
  0x11   : > { %1664 = vmatpush3.bf16.msra.mxu1 (!%p366_p10), %v719_v1  ;;  %1749 = vmatprep.subr.msk.bf16.mxu0 (!%p366_p10), %vm827_vm6, %v2019_v2  ;;  %v509_v25 = vld [vmem:[#allocation2 + $0x14] sm:$0x1] (!%p366_p10)  ;;  %v513_v32 = vld [vmem:[#allocation2 + $0x1c] sm:$0x1] (!%p366_p10)  ;;  %vm2058_vm8 = vmand (!%p366_p10), %vm498_vm4, %vm499_vm5  ;;  %s1898_s16 = smov (!%p366_p10), 124   ;;  %s1899_s11 = smov (!%p366_p10), 116  }
  0x12   : > { %vm704_vm9 = vcmask (!%p366_p10), 64512   ;;  %vm814_vm10 = vcmask (!%p366_p10), 31744   ;;  %vm1242_vm11 = vcmask (!%p366_p10), 130048  }
  0x16   : > { %s2005_s19 = scalar_select %p437_p11, %s1887_s30, 1 }
  0x18   : > { %s1635_s22 = sshll.u32 %s2005_s19, 6  ;;  %s1636_s14 = sshll.u32 %s2005_s19, 3 }
  0x19   : > { %s2014_s25 = scalar_lea.vmem %s2325_s0, %s1635_s22  ;;  %s455_s22 = scalar_lea.vmem %s2326_s1, %s1636_s14 }
  0x1a   : > { %v2022_v3 = vld [vmem:[%s2014_s25] sm:$0xf]  ;;  %v536_v4 = vld [vmem:[%s2014_s25 + $0x4] sm:$0x1]  ;;  %v2026_v5 = vld [vmem:[%s2014_s25 + $0x8] sm:$0xf] }
  0x1b   : > { %v538_v6 = vld [vmem:[%s2014_s25 + $0xc] sm:$0x1]  ;;  %v572_v7 = vshrl.u32 %v2022_v3, 16  ;;  %v575_v8 = vshll.u32 %v2022_v3, 16  ;;  %v581_v9 = vshll.u32 %v536_v4, 16  ;;  %v586_v10 = vshrl.u32 %v2026_v5, 16 }
  0x1c   : > { %v589_v11 = vshll.u32 %v2026_v5, 16  ;;  %v595_v12 = vshll.u32 %v538_v6, 16  ;;  %v2036_v13 = vld [vmem:[%s2014_s25 + $0x10] sm:$0xf]  ;;  %v540_v14 = vld [vmem:[%s2014_s25 + $0x14] sm:$0x1] }
  0x1d   : > { %v574_v15 = vrot.slane %v572_v7, 4  ;;  %v577_v16 = vrot.slane %v575_v8, 5  ;;  %v583_v17 = vrot.slane %v581_v9, 5  ;;  %v588_v18 = vrot.slane %v586_v10, 4  ;;  %v2040_v19 = vld [vmem:[%s2014_s25 + $0x18] sm:$0xf] }
  0x1e   : > { %v591_v20 = vrot.slane %v589_v11, 5  ;;  %v597_v21 = vrot.slane %v595_v12, 5  ;;  %v542_v22 = vld [vmem:[%s2014_s25 + $0x1c] sm:$0x1]  ;;  %v600_v23 = vshrl.u32 %v2036_v13, 16  ;;  %v603_v24 = vshll.u32 %v2036_v13, 16 }
  0x1f   : > { %v578_v27 = vor.u32 %v577_v16, %v574_v15  ;;  %v609_v28 = vshll.u32 %v540_v14, 16  ;;  %v614_v29 = vshrl.u32 %v2040_v19, 16  ;;  %v617_v30 = vshll.u32 %v2040_v19, 16  ;;  %v1578_v31 = vld [vmem:[%s2014_s25 + $0x8] sm:$0xf]  ;;  %s433_s14 = sand.u32 1, %s1879_s28  }
  0x20   : > { %v592_v33 = vor.u32 %v591_v20, %v588_v18  ;;  %v602_v34 = vrot.slane %v600_v23, 4  ;;  %v605_v35 = vrot.slane %v603_v24, 5  ;;  %v623_v36 = vshll.u32 %v542_v22, 16  ;;  %v1580_v37 = vld [vmem:[%s2014_s25 + $0x10] sm:$0xf]  ;;  %s1637_s19 = sshll.u32 %s1887_s30, 10 }
  0x21   : > { %497 = vst.msk [vmem:[#allocation2] sm:$0xf] %vm496_vm3, %v1578_v31  ;;  %v579_v39 = vrot.slane %v578_v27, 4  ;;  %v611_v40 = vrot.slane %v609_v28, 5  ;;  %v616_v41 = vrot.slane %v614_v29, 4  ;;  %v619_v42 = vrot.slane %v617_v30, 5 }
  0x22   : > { %504 = vst.msk [vmem:[#allocation2 + $0x8] sm:$0xf] %vm496_vm3, %v1580_v37  ;;  %v1582_v43 = vld [vmem:[%s2014_s25 + $0x18] sm:$0xf]  ;;  %v593_v44 = vrot.slane %v592_v33, 4  ;;  %v606_v45 = vor.u32 %v605_v35, %v602_v34  ;;  %v625_v46 = vrot.slane %v623_v36, 5 }
  0x23   : > { %v1583_v47 = vld [vmem:[%s2014_s25 + $0x1c] sm:$0x1]  ;;  %v1584_v48 = vld [vmem:[%s2014_s25 + $0x20] sm:$0xf]  ;;  %508 = vst.msk [vmem:[#allocation2 + $0x10] sm:$0xf] %vm496_vm3, %v1582_v43  ;;  %v584_v49 = vsel %vm2047_vm7, %v579_v39, %v583_v17  ;;  %v620_v50 = vor.u32 %v619_v42, %v616_v41 }
  0x24   : > { %v1585_v51 = vld [vmem:[%s2014_s25 + $0x24] sm:$0x1]  ;;  %v510_v52 = vsel %vm2058_vm8, %v1583_v47, %v509_v25  ;;  %512 = vst.msk [vmem:[#allocation2 + $0x18] sm:$0xf] %vm496_vm3, %v1584_v48  ;;  %v2074_v53 = vld [vmem:[%s2014_s25 + $0x20] sm:$0xf]  ;;  %v598_v55 = vsel %vm2047_vm7, %v593_v44, %v597_v21 }
  0x25   : > { %v544_v54 = vld [vmem:[%s2014_s25 + $0x24] sm:$0x1]  ;;  %v607_v56 = vrot.slane %v606_v45, 4  ;;  %511 = vst [vmem:[#allocation2 + $0x14] sm:$0x1] %v510_v52  ;;  %v514_v57 = vsel %vm2058_vm8, %v1585_v51, %v513_v32  ;;  %v628_v58 = vshrl.u32 %v2074_v53, 16  ;;  %v1592_v59 = vcombine.low %v584_v49, %v598_v55 }
  0x26   : > { %v621_v60 = vrot.slane %v620_v50, 4  ;;  %515 = vst [vmem:[#allocation2 + $0x1c] sm:$0x1] %v514_v57  ;;  %v631_v61 = vshll.u32 %v2074_v53, 16  ;;  %v2086_v63 = vld [vmem:[%s2014_s25 + $0x28] sm:$0xf] }
  0x27   : > { %v612_v62 = vsel %vm2047_vm7, %v607_v56, %v611_v40  ;;  %v637_v0 = vshll.u32 %v544_v54, 16  ;;  %696 = vrot.lane.b32.xlu0 %v1592_v59, %s1897_s12  ;;  %v630_v6 = vrot.slane %v628_v58, 4  ;;  %v546_v10 = vld [vmem:[%s2014_s25 + $0x2c] sm:$0x1]  ;;  %v642_v14 = vshrl.u32 %v2086_v63, 16  ;;  %s2279_s30 = scalar_lea.sflag [#allocation4], %s433_s14 }
  0x28   : > { %v626_v1 = vsel %vm2047_vm7, %v621_v60, %v625_v46  ;;  %v2091_v4 = vld [vmem:[#allocation2] sm:$0xf]  ;;  %v633_v7 = vrot.slane %v631_v61, 5  ;;  %v645_v20 = vshll.u32 %v2086_v63, 16  ;;  %v651_v25 = vshll.u32 %v546_v10, 16 }
  0x29   : > { %v1593_v8 = vcombine.low %v612_v62, %v626_v1  ;;  %v2093_v9 = vld [vmem:[#allocation2 + $0x8] sm:$0xf]  ;;  %v2103_v18 = vrot.slane %v637_v0, 5  ;;  %v2111_v27 = vld [vmem:[%s2014_s25 + $0x30] sm:$0xf]  ;;  %v1111_v28 = vshrl.u32 %v2091_v4, 16 }
  0x2a   : > { %v2098_v11 = vcombine.low %v2091_v4, %v2093_v9  ;;  %v555_v12 = vld [vmem:[#allocation2 + $0x10] sm:$0xf]  ;;  %v634_v24 = vor.u32 %v633_v7, %v630_v6  ;;  %v644_v36 = vrot.slane %v642_v14, 4  ;;  %v548_v37 = vld [vmem:[%s2014_s25 + $0x34] sm:$0x1]  ;;  %v1114_v39 = vshll.u32 %v2091_v4, 16 }
  0x2b   : > { %698 = vrot.lane.b32.xlu1 %v1593_v8, %s1897_s12  ;;  %v557_v15 = vld [vmem:[#allocation2 + $0x18] sm:$0xf]  ;;  %v1139_v16 = vshrl.u32 %v555_v12, 16  ;;  %v1142_v17 = vshll.u32 %v555_v12, 16  ;;  %v1586_v43 = vld [vmem:[%s2014_s25 + $0x28] sm:$0xf] }
  0x2c   : > { %917 = vrot.lane.b32.xlu0 %v2098_v11, %s1898_s16  ;;  %v556_v21 = vld [vmem:[#allocation2 + $0x14] sm:$0x1]  ;;  %v2108_v22 = vcombine.low %v555_v12, %v557_v15  ;;  %v1153_v23 = vshrl.u32 %v557_v15, 16  ;;  %v1156_v34 = vshll.u32 %v557_v15, 16  ;;  %v2119_v42 = vld [vmem:[%s2014_s25 + $0x38] sm:$0xf] }
  0x2d   : > { %v558_v29 = vld [vmem:[#allocation2 + $0x1c] sm:$0x1]  ;;  %v1141_v30 = vrot.slane %v1139_v16, 4  ;;  %v1144_v31 = vrot.slane %v1142_v17, 5  ;;  %v1148_v32 = vshll.u32 %v556_v21, 16  ;;  %v1125_v44 = vshrl.u32 %v2093_v9, 16 }
  0x2e   : > { %v1155_v33 = vrot.slane %v1153_v23, 4  ;;  %v1162_v35 = vshll.u32 %v558_v29, 16  ;;  %v1158_v45 = vrot.slane %v1156_v34, 5  ;;  %v635_v46 = vrot.slane %v634_v24, 4  ;;  %v550_v48 = vld [vmem:[%s2014_s25 + $0x3c] sm:$0x1] }
  0x2f   : > { %v1145_v40 = vor.u32 %v1144_v31, %v1141_v30  ;;  %v1150_v41 = vrot.slane %v1148_v32, 5  ;;  %919 = vrot.lane.b32.xlu1 %v2108_v22, %s1898_s16  ;;  %v647_v47 = vrot.slane %v645_v20, 5  ;;  %v1588_v49 = vld [vmem:[%s2014_s25 + $0x30] sm:$0xf]  ;;  %516 = vst.msk [vmem:[#allocation2 + $0x20] sm:$0xf] %vm496_vm3, %v1586_v43 }
  0x30   : > { %v532_v50 = vld [vmem:[#allocation2 + $0x3c] sm:$0x1]  ;;  %v1164_v52 = vrot.slane %v1162_v35, 5  ;;  %v653_v54 = vrot.slane %v651_v25, 5  ;;  %v656_v55 = vshrl.u32 %v2111_v27, 16  ;;  %v1159_v57 = vor.u32 %v1158_v45, %v1155_v33 }
  0x31   : > { %v1146_v51 = vrot.slane %v1145_v40, 4  ;;  %520 = vst.msk [vmem:[#allocation2 + $0x28] sm:$0xf] %vm496_vm3, %v1588_v49  ;;  %v1590_v56 = vld [vmem:[%s2014_s25 + $0x38] sm:$0xf]  ;;  %v648_v58 = vor.u32 %v647_v47, %v644_v36  ;;  %v659_v59 = vshll.u32 %v2111_v27, 16  ;;  %v640_v12 = vsel %vm2047_vm7, %v635_v46, %v2103_v18 }
  0x32   : > { %v665_v60 = vshll.u32 %v548_v37, 16  ;;  %524 = vst.msk [vmem:[#allocation2 + $0x30] sm:$0xf] %vm496_vm3, %v1590_v56  ;;  %v528_v61 = vld [vmem:[%s455_s22] sm:$0xf]  ;;  %v658_v1 = vrot.slane %v656_v55, 4 }
  0x33   : > { %v529_v62 = vld [vmem:[%s455_s22 + $0x4] sm:$0x1]  ;;  %v1151_v0 = vsel %vm2047_vm7, %v1146_v51, %v1150_v41  ;;  %v670_v6 = vshrl.u32 %v2119_v42, 16  ;;  %v673_v7 = vshll.u32 %v2119_v42, 16  ;;  %531 = vst.msk [vmem:[#allocation2 + $0x38] sm:$0xf] %vm496_vm3, %v528_v61 }
  0x34   : > { %v2144_v8 = vld [vmem:[%s2327_s2] sm:$0x3]  ;;  %v1160_v10 = vrot.slane %v1159_v57, 4  ;;  %v649_v14 = vrot.slane %v648_v58, 4  ;;  %v661_v15 = vrot.slane %v659_v59, 5  ;;  %v679_v20 = vshll.u32 %v550_v48, 16 }
  0x35   : > { %1748 = vmatprep.subr.msk.bf16.mxu1 %vm827_vm6, %v2144_v8  ;;  %v672_v16 = vrot.slane %v670_v6, 4  ;;  %v675_v17 = vrot.slane %v673_v7, 5  ;;  %v533_v21 = vsel %vm2058_vm8, %v529_v62, %v532_v50  ;;  %v667_v29 = vrot.slane %v665_v60, 5  ;;  %v2176_v45 = vld [vmem:[%s2330_s5] sm:$0x3] }
  0x36   : > { %v1165_v23 = vsel %vm2047_vm7, %v1160_v10, %v1164_v52  ;;  %v654_v24 = vsel %vm2047_vm7, %v649_v14, %v653_v54  ;;  %v662_v25 = vor.u32 %v661_v15, %v658_v1  ;;  %534 = vst [vmem:[#allocation2 + $0x3c] sm:$0x1] %v533_v21  ;;  %v681_v32 = vrot.slane %v679_v20, 5  ;;  %v1579_v48 = vld [vmem:[%s2014_s25 + $0xc] sm:$0x1] }
  0x37   : > { %v2157_v18 = vcombine.low %v1151_v0, %v1165_v23  ;;  %v1594_v30 = vcombine.low %v640_v12, %v654_v24  ;;  %v676_v31 = vor.u32 %v675_v17, %v672_v16  ;;  %v1128_v33 = vshll.u32 %v2093_v9, 16  ;;  %v559_v9 = vld [vmem:[#allocation2 + $0x20] sm:$0xf]  ;;  %v501_v49 = vld [vmem:[#allocation2 + $0x4] sm:$0x1] }
  0x38   : > { %v663_v34 = vrot.slane %v662_v25, 4  ;;  %v2163_v36 = vrot.slane %v1111_v28, 4  ;;  %v2167_v40 = vrot.slane %v1114_v39, 5  ;;  %v2169_v41 = vrot.slane %v1125_v44, 4  ;;  %v1581_v44 = vld [vmem:[%s2014_s25 + $0x14] sm:$0x1] }
  0x39   : > { %700 = vrot.lane.b32.xlu0 %v1594_v30, %s1897_s12  ;;  %v677_v35 = vrot.slane %v676_v31, 4  ;;  %v1130_v4 = vrot.slane %v1128_v33, 5  ;;  %v1167_v28 = vshrl.u32 %v559_v9, 16  ;;  %v1600_v39 = vcombine.low %v2022_v3, %v2026_v5  ;;  %v505_v50 = vld [vmem:[#allocation2 + $0xc] sm:$0x1] }
  0x3a   : > { %v668_v37 = vsel %vm2047_vm7, %v663_v34, %v667_v29  ;;  %v565_v47 = vld [vmem:[#allocation2 + $0x38] sm:$0xf]  ;;  %v561_v51 = vld [vmem:[#allocation2 + $0x28] sm:$0xf]  ;;  %v1170_v52 = vshll.u32 %v559_v9, 16  ;;  %v2187_v56 = vsel %vm827_vm6, %v2019_v2, 0  ;;  %v502_v60 = vsel %vm2058_vm8, %v1579_v48, %v501_v49 }
  0x3b   : > { %v682_v43 = vsel %vm2047_vm7, %v677_v35, %v681_v32  ;;  %v1209_v54 = vshrl.u32 %v565_v47, 16  ;;  %v1212_v55 = vshll.u32 %v565_v47, 16  ;;  %v1181_v57 = vshrl.u32 %v561_v51, 16  ;;  %1684 = vmatpush3.bf16.msra.mxu0 %v2187_v56  ;;  %v1587_v3 = vld [vmem:[%s2014_s25 + $0x2c] sm:$0x1] }
  0x3c   : > { %v1595_v46 = vcombine.low %v668_v37, %v682_v43  ;;  %v1184_v58 = vshll.u32 %v561_v51, 16  ;;  %1751 = vmatprep.subr.msk.bf16.mxu0 %vm827_vm6, %v2176_v45  ;;  %v506_v61 = vsel %vm2058_vm8, %v1581_v44, %v505_v50  ;;  %v1589_v62 = vld [vmem:[%s2014_s25 + $0x34] sm:$0x1]  ;;  %v517_v0 = vld [vmem:[#allocation2 + $0x24] sm:$0x1]  ;;  %v1601_v1 = vcombine.low %v2036_v13, %v2040_v19 }
  0x3d   : > { %1014 = vrot.lane.b32.xlu0 %v2098_v11, %s1899_s11  ;;  %v563_v11 = vld [vmem:[#allocation2 + $0x30] sm:$0xf]  ;;  %v1610_v6 = vcombine.low %v559_v9, %v561_v51  ;;  %v1169_v7 = vrot.slane %v1167_v28, 4  ;;  %503 = vst [vmem:[#allocation2 + $0x4] sm:$0x1] %v502_v60  ;;  %v518_v10 = vsel %vm2058_vm8, %v1587_v3, %v517_v0  ;;  %v1172_v15 = vrot.slane %v1170_v52, 5 }
  0x3e   : > { %702 = vrot.lane.b32.xlu1 %v1595_v46, %s1897_s12  ;;  %v1195_v5 = vshrl.u32 %v563_v11, 16  ;;  %v1198_v59 = vshll.u32 %v563_v11, 16  ;;  %507 = vst [vmem:[#allocation2 + $0xc] sm:$0x1] %v506_v61  ;;  %v521_v12 = vld [vmem:[#allocation2 + $0x2c] sm:$0x1]  ;;  %v1117_v24 = vor.u32 %v2167_v40, %v2163_v36  ;;  %v1131_v25 = vor.u32 %v1130_v4, %v2169_v41 }
  0x3f   : > { %v1591_v14 = vld [vmem:[%s2014_s25 + $0x3c] sm:$0x1]  ;;  %v1211_v16 = vrot.slane %v1209_v54, 4  ;;  %v1214_v17 = vrot.slane %v1212_v55, 5  ;;  %519 = vst [vmem:[#allocation2 + $0x24] sm:$0x1] %v518_v10  ;;  %v522_v20 = vsel %vm2058_vm8, %v1589_v62, %v521_v12  ;;  %v1602_v30 = vcombine.low %v2074_v53, %v2086_v63 }
  0x40   : > { %v525_v13 = vld [vmem:[#allocation2 + $0x34] sm:$0x1]  ;;  %v1183_v19 = vrot.slane %v1181_v57, 4  ;;  %v1186_v21 = vrot.slane %v1184_v58, 5  ;;  %523 = vst [vmem:[#allocation2 + $0x2c] sm:$0x1] %v522_v20  ;;  %v1173_v31 = vor.u32 %v1172_v15, %v1169_v7  ;;  %v1611_v32 = vcombine.low %v563_v11, %v565_v47 }
  0x41   : > { %806 = vrot.lane.b32.xlu0 %v1600_v39, %s1899_s11  ;;  %v526_v23 = vsel %vm2058_vm8, %v1591_v14, %v525_v13  ;;  %v1200_v29 = vrot.slane %v1198_v59, 5  ;;  %v1215_v33 = vor.u32 %v1214_v17, %v1211_v16  ;;  %v1118_v34 = vrot.slane %v1117_v24, 4  ;;  %v566_v53 = vld [vmem:[#allocation2 + $0x3c] sm:$0x1]  ;;  %v1816_v12 = vld [vmem:[%s2331_s6] sm:$0xff]   ;;  %s1900_s12 = smov [#allocation3]  }
  0x42   : > { %1016 = vrot.lane.b32.xlu1 %v2108_v22, %s1899_s11  ;;  %v1197_v22 = vrot.slane %v1195_v5, 4  ;;  %527 = vst [vmem:[#allocation2 + $0x34] sm:$0x1] %v526_v23  ;;  %v1187_v38 = vor.u32 %v1186_v21, %v1183_v19  ;;  %v1132_v35 = vrot.slane %v1131_v25, 4  ;;  %v1603_v41 = vcombine.low %v2111_v27, %v2119_v42 }
  0x43   : > { %v1174_v63 = vrot.slane %v1173_v31, 4  ;;  %v1216_v46 = vrot.slane %v1215_v33, 4  ;;  %v1218_v48 = vshll.u32 %v566_v53, 16  ;;  %v1035_v26 = vsel %vm827_vm6, %v2176_v45, 0  ;;  %v1629_v31 = vld [vmem:[%s2332_s7] ss:$0 sm:$0xff] }
  0x44   : > { %v1201_v37 = vor.u32 %v1200_v29, %v1197_v22  ;;  %v552_v36 = vld [vmem:[#allocation2 + $0x4] sm:$0x1]  ;;  %v1188_v39 = vrot.slane %v1187_v38, 4 }
  0x45   : > { %1018 = vrot.lane.b32.xlu0 %v1610_v6, %s1899_s11  ;;  %v554_v40 = vld [vmem:[#allocation2 + $0xc] sm:$0x1]  ;;  %v1120_v43 = vshll.u32 %v552_v36, 16  ;;  %v1220_v27 = vrot.slane %v1218_v48, 5 }
  0x46   : > { %808 = vrot.lane.b32.xlu1 %v1601_v1, %s1899_s11  ;;  %v1134_v9 = vshll.u32 %v554_v40, 16  ;;  %v560_v4 = vld [vmem:[#allocation2 + $0x24] sm:$0x1]  ;;  %v1202_v52 = vrot.slane %v1201_v37, 4 }
  0x47   : > { %v562_v28 = vld [vmem:[#allocation2 + $0x2c] sm:$0x1]  ;;  %v1176_v47 = vshll.u32 %v560_v4, 16  ;;  %v1122_v44 = vrot.slane %v1120_v43, 5  ;;  %v1221_v59 = vsel %vm2047_vm7, %v1216_v46, %v1220_v27 }
  0x48   : > { %v1136_v49 = vrot.slane %v1134_v9, 5  ;;  %v1190_v50 = vshll.u32 %v562_v28, 16 }
  0x49   : > { %810 = vrot.lane.b32.xlu0 %v1602_v30, %s1899_s11  ;;  %v564_v51 = vld [vmem:[#allocation2 + $0x34] sm:$0x1]  ;;  %v1178_v54 = vrot.slane %v1176_v47, 5  ;;  %v1123_v42 = vsel %vm2047_vm7, %v1118_v34, %v1122_v44 }
  0x4a   : > { %1020 = vrot.lane.b32.xlu1 %v1611_v32, %s1899_s11  ;;  %v1204_v55 = vshll.u32 %v564_v51, 16  ;;  %v1137_v57 = vsel %vm2047_vm7, %v1132_v35, %v1136_v49  ;;  %v1192_v58 = vrot.slane %v1190_v50, 5 }
  0x4b   : > { %v1620_v11 = vcombine.low %v1123_v42, %v1137_v57  ;;  %v1179_v3 = vsel %vm2047_vm7, %v1174_v63, %v1178_v54 }
  0x4c   : > { %v1206_v5 = vrot.slane %v1204_v55, 5  ;;  %v1193_v60 = vsel %vm2047_vm7, %v1188_v39, %v1192_v58 }
  0x4d   : > { %921 = vrot.lane.b32.xlu0 %v1610_v6, %s1898_s16  ;;  %v1622_v61 = vcombine.low %v1179_v3, %v1193_v60  ;;  %v829_v6 = vsel %vm827_vm6, %v2144_v8, 0 }
  0x4e   : > { %812 = vrot.lane.b32.xlu1 %v1603_v41, %s1899_s11  ;;  %v1207_v62 = vsel %vm2047_vm7, %v1202_v52, %v1206_v5  ;;  %s2273_s11 = scalar_lea.hbm %s2333_s8, %s1637_s19 }
  0x4f   : > { %v1623_v0 = vcombine.low %v1207_v62, %v1221_v59 }
  0x52   : > { %923 = vrot.lane.b32.xlu1 %v1611_v32, %s1898_s16  ;;  %s1573_s16 = sshll.u32 %s433_s14, 6 }
  0x53   : > { %s435_s22 = scalar_lea.vmem [#allocation3], %s1573_s16  ;;  %s1821_s16 = sshll.u32 %s1900_s12, 4  ;;  %s1822_s16 = int_to_ptr.vmem [resolvable:$false] %s1821_s16 }
  0x54   : > { %s1368_s23 = sshll.u32 %s435_s22, 4  ;;  %s1823_s20 = scalar_lea.vmem %s1822_s16, 2048  ;;  %s2275_s23 = int_to_ptr.vmem [resolvable:$true] %s1368_s23 }
  0x55   : > { %s1817_s25 = scalar_lea.vmem %s2275_s23, 1024  ;;  %p1824_p1 = scmp.lt.s32.totalorder %s2275_s23, %s1822_s16 }
  0x56   : > { %p1818_p12 = scmp.ne.s32.totalorder %s2275_s23, %s1817_s25  ;;  %p1825_p2 = scmp.lt.s32.totalorder %s1823_s20, %s1817_s25 }
  0x58   : > { %p1819_p13 = pnand %p1818_p12, %p1988_p4  ;;  %p1826_p3 = por %p1825_p2, %p1824_p1 }
  0x5a   : > { %p1820_p0 = pneg %p1819_p13 }
  0x5c   : > { %p1827_p5 = pnand %p1826_p3, %p1820_p0 }
  0x99   : > { %v697_v1 = vpop.permute.xlu0 %696 }
  0x9a   : > { %1665 = vmatprep.mubr.msk.bf16.mxu1 %vm704_vm9, %v697_v1 }
  0x9d   : > { %v699_v7 = vpop.permute.xlu1 %698 }
  0x9e   : > { %1666 = vmatmul.mubr.msk.bf16.vlgmr.msra.gmra.mrb[0].mxu1 %vm704_vm9, %v699_v7  ;;  %v918_v10 = vpop.permute.xlu0 %917 }
  0x9f   : > { %1685 = vmatprep.mubr.msk.bf16.mxu0 %vm814_vm10, %v918_v10  ;;  %1674 = vmatpush3.bf16.msra.mxu1 %v829_v6 }
  0xa0   : > { %1750 = vmatprep.subr.msk.bf16.mxu1 %vm827_vm6, %v2019_v2 }
  0xa1   : > { %v920_v14 = vpop.permute.xlu1 %919 }
  0xa2   : > { %1686 = vmatmul.mubr.msk.bf16.vlgmr.msra.gmra.mrb[0].mxu0 %vm814_vm10, %v920_v14 }
  0xa3   : > { %1694 = vmatpush3.bf16.msra.mxu0 %v1035_v26 }
  0xa4   : > { %1703 = vmatprep.subr.bf16.mxu0 %v1816_v12 }
  0xab   : > { %v701_v8 = vpop.permute.xlu0 %700 }
  0xac   : > { %1669 = vmatprep.mubr.msk.bf16.mxu1 %vm704_vm9, %v701_v8 }
  0xaf   : > { %v1015_v15 = vpop.permute.xlu0 %1014 }
  0xb0   : > { %v703_v16 = vpop.permute.xlu1 %702  ;;  %1695 = vmatprep.mubr.msk.bf16.mxu0 %vm814_vm10, %v1015_v15 }
  0xb1   : > { %1670 = vmatmul.mubr.msk.bf16.gmra.mrb[4].mxu1 %vm704_vm9, %v703_v16 }
  0xb3   : > { %v807_v45 = vpop.permute.xlu0 %806 }
  0xb4   : > { %v1017_v17 = vpop.permute.xlu1 %1016  ;;  %1675 = vmatprep.mubr.msk.bf16.mxu1 %vm814_vm10, %v807_v45 }
  0xb5   : > { %1696 = vmatmul.mubr.msk.bf16.vlgmr.msra.gmra.mrb[0].mxu0 %vm814_vm10, %v1017_v17 }
  0xb6   : > { %1704 = vmatpush3.bf16.msra.mxu0 %v1816_v12 }
  0xb7   : > { %v1019_v2 = vpop.permute.xlu0 %1018 }
  0xb8   : > { %v809_v20 = vpop.permute.xlu1 %808  ;;  %1699 = vmatprep.mubr.msk.bf16.mxu0 %vm814_vm10, %v1019_v2 }
  0xb9   : > { %1676 = vmatmul.mubr.msk.bf16.vlgmr.msra.gmra.mrb[0].mxu1 %vm814_vm10, %v809_v20 }
  0xba   : > { %1714 = vmatpush3.bf16.msra.mxu1 %v2187_v56 }
  0xbb   : > { %v811_v13 = vpop.permute.xlu0 %810 }
  0xbc   : > { %v1021_v19 = vpop.permute.xlu1 %1020  ;;  %1679 = vmatprep.mubr.msk.bf16.mxu1 %vm814_vm10, %v811_v13 }
  0xbd   : > { %1700 = vmatmul.mubr.msk.bf16.gmra.mrb[4].mxu0 %vm814_vm10, %v1021_v19 }
  0xbe   : > { %1705 = vmatprep.mubr.msk.bf16.mxu0 %vm1242_vm11, %v1620_v11 }
  0xbf   : > { %v922_v21 = vpop.permute.xlu0 %921 }
  0xc0   : > { %v813_v23 = vpop.permute.xlu1 %812 }
  0xc1   : > { %1680 = vmatmul.mubr.msk.bf16.gmra.mrb[4].mxu1 %vm814_vm10, %v813_v23 }
  0xc2   : > { %1689 = vmatprep.mubr.msk.bf16.mxu1 %vm814_vm10, %v922_v21 }
  0xc4   : > { %v924_v56 = vpop.permute.xlu1 %923 }
  0xc5   : > { %1706 = vmatmul.mubr.msk.bf16.vlgmr.msra.gmra.mrb[0].mxu0 %vm1242_vm11, %v2157_v18 }
  0xc6   : > { %1709 = vmatprep.mubr.msk.bf16.mxu0 %vm1242_vm11, %v1622_v61 }
  0xcd   : > { %1690 = vmatmul.mubr.msk.bf16.vlgmr.msra.gmra.mrb[4].mxu1 %vm814_vm10, %v924_v56  ;;  %1710 = vmatmul.mubr.msk.bf16.gmra.mrb[4].mxu0 %vm1242_vm11, %v1623_v0 }
 0x18c   : > { %v1677_v24 = vpop.f32.mrb[0].mxu1 }
 0x18d   : > { %v865_v25 = vpop.f32.mrb[1].mxu1 }
 0x18e   : > { %v1678_v22 = vpop.f32.mrb[2].mxu1 }
 0x18f   : > { %v868_v29 = vpop.f32.mrb[3].mxu1 }
 0x198   : > { %v1707_v30 = vpop.f32.mrb[0].mxu0 }
 0x199   : > { %v1715_v32 = vadd.f32 %v1707_v30, %v1677_v24  ;;  %v1289_v33 = vpop.f32.mrb[1].mxu0 }
 0x19a   : > { %v1716_v18 = vadd.f32 %v1289_v33, %v865_v25  ;;  %v1708_v38 = vpop.f32.mrb[2].mxu0 }
 0x19b   : > { %v1337_v34 = vadd.f32 %v1715_v32, %v1629_v31  ;;  %v1717_v35 = vadd.f32 %v1708_v38, %v1678_v22  ;;  %v1292_v37 = vpop.f32.mrb[3].mxu0 }
 0x19c   : > { %v1335_v36 = vadd.f32 %v1716_v18, %v1629_v31  ;;  %v1718_v40 = vadd.f32 %v1292_v37, %v868_v29 }
 0x19d   : > { %1345 = vst [vmem:[%s435_s22 + $0x10] sm:$0xff] %v1337_v34  ;;  %v1338_v41 = vadd.f32 %v1717_v35, %v1629_v31 }
 0x19e   : > { %1343 = vst [vmem:[%s435_s22] sm:$0xff] %v1335_v36  ;;  %v1336_v43 = vadd.f32 %v1718_v40, %v1629_v31 }
 0x19f   : > { %1346 = vst [vmem:[%s435_s22 + $0x18] sm:$0xff] %v1338_v41 }
 0x1a0   : > { %1344 = vst [vmem:[%s435_s22 + $0x8] sm:$0xff] %v1336_v43  ;;  %v1691_v9 = vpop.f32.mrb[4].mxu1  ;;  %v1711_v4 = vpop.f32.mrb[4].mxu0 }
 0x1a1   : > { %v990_v53 = vpop.f32.mrb[5].mxu1  ;;  %v1719_v63 = vadd.f32 %v1711_v4, %v1691_v9  ;;  %v1305_v46 = vpop.f32.mrb[5].mxu0 }
 0x1a2   : > { %v1692_v28 = vpop.f32.mrb[6].mxu1  ;;  %v1720_v47 = vadd.f32 %v1305_v46, %v990_v53  ;;  %v1712_v48 = vpop.f32.mrb[6].mxu0 }
 0x1a3   : > { %v993_v39 = vpop.f32.mrb[7].mxu1  ;;  %v1341_v44 = vadd.f32 %v1719_v63, %v1629_v31  ;;  %v1721_v49 = vadd.f32 %v1712_v48, %v1692_v28  ;;  %v1308_v50 = vpop.f32.mrb[7].mxu0 }
 0x1a4   : > { %v1339_v51 = vadd.f32 %v1720_v47, %v1629_v31  ;;  %v1722_v52 = vadd.f32 %v1308_v50, %v993_v39 }
 0x1a5   : > { %1349 = vst [vmem:[%s435_s22 + $0x30] sm:$0xff] %v1341_v44  ;;  %v1342_v54 = vadd.f32 %v1721_v49, %v1629_v31 }
 0x1a6   : > { %1347 = vst [vmem:[%s435_s22 + $0x20] sm:$0xff] %v1339_v51  ;;  %v1340_v55 = vadd.f32 %v1722_v52, %v1629_v31 }
 0x1a7   : > { %1350 = vst [vmem:[%s435_s22 + $0x38] sm:$0xff] %v1342_v54 }
 0x1a8   : > { %1348 = vst [vmem:[%s435_s22 + $0x28] sm:$0xff] %v1340_v55 }
 0x1a9   : > { %1830 = shalt.err (!%p1827_p5)
}
 0x1aa   : > { %s1831_s14 = scalar_lea.hbm %s2273_s11, 1024  ;;  %s1835_s19 = scalar_lea.hbm %s2333_s8, 2048 }
 0x1ab   : > { %p1832_p6 = scmp.ne.s32.totalorder %s2273_s11, %s1831_s14  ;;  %p1836_p10 = scmp.lt.u32.totalorder %s2273_s11, %s2333_s8 }
 0x1ac   : > { %p1837_p11 = scmp.lt.u32.totalorder %s1835_s19, %s1831_s14  ;;  %p1839_p13 = scmp.lt.u32.totalorder %s1831_s14, %s2273_s11 }
 0x1ad   : > { %p1833_p7 = pnand %p1832_p6, %p1988_p4 }
 0x1ae   : > { %p1838_p12 = por %p1837_p11, %p1836_p10 }
 0x1af   : > { %p1834_p9 = pneg %p1833_p7 }
 0x1b0   : > { %p1840_p0 = por %p1839_p13, %p1838_p12 }
 0x1b2   : > { %p1841_p1 = pnand %p1840_p0, %p1834_p9 }
 0x1b4   : > { %1844 = shalt.err (!%p1841_p1)
}
 0x1b5   : > { %s1901_s25 = smov 128   ;;  %s1902_s12 = smov 8  }
 0x1b6   : > { %1752 = dma.vmem_to_hbm [thread:$0]  (%p1988_p4), %s2275_s23, 1024, %s2273_s11, %s2279_s30, %s1901_s25, %s1901_s25, %s1902_s12  }
 0x1b7 PF: > { %p1758_p2 = scmp.ge.s32.totalorder %s1895_s10, 2  ;;  %s1383_s16 = sand.u32 1, %s1875_s27  }
 0x1b8   : > { %s1384_s20 = scalar_lea.sflag [#allocation4], %s1383_s16 }
 0x1b9   : > { %p1755_p3 = pnand %p1758_p2, %p1995_p8 }
 0x1bb   : > { %1870 = dma.done.wait (!%p1755_p3), %s1384_s20, 1024  }
 0x1bc   : > { %1872 = vsyncadd (!%p1755_p3), %s1384_s20, 4294966272  ;;  %s21_s10 = sadd.s32 1, %s1895_s10   ;;  %s2340_s27 = smov %s1879_s28 }
 0x1bd   : > { %p18_p5 = scmp.ge.s32.totalorder %s21_s10, 4   ;;  %s2341_s28 = smov %s1883_s29 }
 0x1be   : > { %s2342_s29 = smov %s2001_s18  ;;  %s2343_s30 = smov %s1891_s9 }
 0x1bf   : > { %s2344_s9 = smov %s2346_s13  ;;  %20 = sbr.rel (!%p18_p5) target bundleno = 4 (0x4), region = 110 }
 0x1c6   :  { %1389 = vsyncpa [#allocation4], 1 }
 0x1c7   :  { %1391 = vsyncpa [#allocation4 + $0x1], 1 }

</bundles_post_ra>
